<compile_context>
chip_gen: v5e
topology: v5e:2x2
jax: 0.10.0
libtpu: 0.0.40
codegen_flags: <defaults>
</compile_context>

<pallas_src>
import functools

import jax
import jax.numpy as jnp
from jax import lax
from jax.experimental import pallas as pl
from jax.experimental.pallas import tpu as pltpu


_LANE = 128
_SUBLANE = 8
_TARGET_BLOCK_BYTES = 4 << 20          # ~4 MiB row tiles (good on v5e/v6e/v7x)
_VMEM_LIMIT_BYTES = 48 * 1024 * 1024   # > scoped defaults, < v7x physical 64 MiB


def _round_up(x, m):
    return (x + m - 1) // m * m


def _choose_tile_rows(rows, row_bytes):
    """Largest multiple-of-8 row tile within the block-byte budget."""
    t = max(_SUBLANE, (_TARGET_BLOCK_BYTES // row_bytes) // _SUBLANE * _SUBLANE)
    t = min(t, _round_up(rows, _SUBLANE))
    return int(t)


# ---------------------------------------------------------------------------
# Pass 1: row-wise softmax + accumulate column sums into per-group partials.
# Grid: (n_groups [parallel], tiles_per_group [arbitrary, reduction]).
# ---------------------------------------------------------------------------
def _softmax_colsum_kernel(x_ref, acc_ref, *, rows_total, tile_rows,
                           tiles_per_group):
    g = pl.program_id(0)
    t = pl.program_id(1)

    @pl.when(t == 0)
    def _():
        acc_ref[...] = jnp.zeros_like(acc_ref)

    x = x_ref[...].astype(jnp.float32)                       # (tile_rows, Vp)
    m = jnp.max(x, axis=-1, keepdims=True)
    e = jnp.exp(x - m)
    denom = jnp.sum(e, axis=-1, keepdims=True)
    probs = e * pl.reciprocal(denom, approx=True)            # EUP slot: ~free

    # Mask rows beyond R (only needed when the last tile is partial).
    if rows_total % tile_rows != 0:
        row0 = (g * tiles_per_group + t) * tile_rows
        row_ids = row0 + lax.broadcasted_iota(jnp.int32, probs.shape, 0)
        probs = jnp.where(row_ids < rows_total, probs, 0.0)

    # Accumulator block is (1, 8, Vp) (keeps the sublane dim a multiple of 8);
    # every sublane row holds the same running column sum.
    acc_ref[...] += jnp.sum(probs, axis=0, keepdims=True)[:, None, :]


# ---------------------------------------------------------------------------
# Pass 2: pure broadcast add of the precomputed adjustment row.
# ---------------------------------------------------------------------------
def _broadcast_add_kernel(adj_ref, x_ref, o_ref):
    o_ref[...] = (x_ref[...].astype(jnp.float32) + adj_ref[...]).astype(o_ref.dtype)


@jax.jit
def token_distribution_regulator(logits, target_dist, phase_factors,
                                 regulation_strength):
    """logits: (B, S, V); returns adjusted logits of the same shape/dtype."""
    B, S, V = logits.shape
    R = B * S
    Vp = _round_up(V, _LANE)

    x2d = logits.reshape(R, V)
    if Vp != V:
        # Keep the lane dim dense (unmasked vst); pad with a huge negative so
        # the padded columns contribute exactly 0 to the softmax.
        x2d = jnp.pad(x2d, ((0, 0), (0, Vp - V)), constant_values=-1e30)

    tile_rows = _choose_tile_rows(R, Vp * 4)
    total_tiles = pl.cdiv(R, tile_rows)
    n_groups = 2 if (total_tiles >= 2 and total_tiles % 2 == 0) else 1
    tiles_per_group = total_tiles // n_groups

    # --- pass 1: per-group softmax column sums -----------------------------
    kern1 = functools.partial(
        _softmax_colsum_kernel, rows_total=R, tile_rows=tile_rows,
        tiles_per_group=tiles_per_group)

    partial_sums = pl.pallas_call(
        kern1,
        out_shape=jax.ShapeDtypeStruct((n_groups, _SUBLANE, Vp), jnp.float32),
        grid_spec=pltpu.PrefetchScalarGridSpec(
            num_scalar_prefetch=0,
            grid=(n_groups, tiles_per_group),
            in_specs=[pl.BlockSpec(
                (tile_rows, Vp),
                lambda g, t: (g * tiles_per_group + t, 0))],
            out_specs=pl.BlockSpec((1, _SUBLANE, Vp), lambda g, t: (g, 0, 0)),
        ),
        compiler_params=pltpu.CompilerParams(
            dimension_semantics=("parallel", "arbitrary"),
            vmem_limit_bytes=_VMEM_LIMIT_BYTES),
    )(x2d)

    # All 8 sublane rows of each group hold the same sum; take row 0.
    batch_dist = partial_sums[:, 0, :V].sum(axis=0) / jnp.float32(R)   # (V,)

    # --- tiny O(V) KL + phase adjustment, hoisted out of the kernels -------
    target = target_dist.reshape(V).astype(jnp.float32)
    phase = phase_factors.reshape(V).astype(jnp.float32)
    strength = regulation_strength.reshape(-1)[0].astype(jnp.float32)
    # F.kl_div(batch_dist.log(), target, reduction='batchmean') on a (V,) input
    #   = sum(target * (log(target) - log(batch_dist))) / V
    safe_bd = jnp.maximum(batch_dist, 1e-30)          # guard log(0) underflow
    kl = jnp.sum(target * (jnp.log(target) - jnp.log(safe_bd))) / V
    adj = jnp.tanh(phase) * strength * kl             # (V,)
    adj_row = jnp.pad(adj, (0, Vp - V)).reshape(1, Vp)

    # --- pass 2: broadcast add (in-place via aliasing) ----------------------
    out2d = pl.pallas_call(
        _broadcast_add_kernel,
        out_shape=jax.ShapeDtypeStruct((R, Vp), logits.dtype),
        grid_spec=pltpu.PrefetchScalarGridSpec(
            num_scalar_prefetch=0,
            grid=(total_tiles,),
            in_specs=[
                pl.BlockSpec((1, Vp), lambda i: (0, 0)),            # adj row
                pl.BlockSpec((tile_rows, Vp), lambda i: (i, 0)),    # logits
            ],
            out_specs=pl.BlockSpec((tile_rows, Vp), lambda i: (i, 0)),
        ),
        compiler_params=pltpu.CompilerParams(
            dimension_semantics=("parallel",),
            vmem_limit_bytes=_VMEM_LIMIT_BYTES),
        input_output_aliases={1: 0},   # write adjusted logits in place
    )(adj_row, x2d)

    out2d = out2d[:, :V] if Vp != V else out2d
    return out2d.reshape(B, S, V)


# ---------------------------------------------------------------------------
# Parameter construction (matches nn.Module.__init__) and a pure-JAX reference.
# ---------------------------------------------------------------------------
def make_params(vocab_size, key):
    ranks = jnp.arange(1, vocab_size + 1, dtype=jnp.float32)
    dist = 1.0 / (ranks * jnp.log(ranks + 1.0))
    target_dist = dist / jnp.sum(dist)                        # Zipf target
    regulation_strength = jnp.ones((1,), jnp.float32) * 0.1
    phase_factors = jax.random.normal(key, (vocab_size,), jnp.float32) * 0.02
    return target_dist, phase_factors, regulation_strength


def reference(logits, target_dist, phase_factors, regulation_strength):
    probs = jax.nn.softmax(logits, axis=-1)
    batch_dist = probs.mean(axis=(0, 1))
    V = target_dist.shape[0]
    kl = jnp.sum(target_dist * (jnp.log(target_dist) - jnp.log(batch_dist))) / V
    adj = jnp.tanh(phase_factors) * regulation_strength[0] * kl
    return logits + adj[None, None, :]


if __name__ == "__main__":
    B, S, V = 2, 8, 128          # vocab_size=128; `dim` is unused in forward
    key = jax.random.PRNGKey(0)
    k_logits, k_phase = jax.random.split(key)

    logits = jax.random.normal(k_logits, (B, S, V), jnp.float32)
    target_dist, phase_factors, regulation_strength = make_params(V, k_phase)

    out = token_distribution_regulator(
        logits, target_dist, phase_factors, regulation_strength)
    out = jax.block_until_ready(out)

    ref = reference(logits, target_dist, phase_factors, regulation_strength)
    assert out.shape == (B, S, V)
    assert jnp.allclose(out, ref, atol=1e-4, rtol=1e-4), "mismatch vs reference"

    print("KERNEL_OK")
</pallas_src>

<mosaic_0001>
module attributes {stable_mosaic.version = 11 : i64} {
  func.func @_softmax_colsum_kernel(%arg0: i32, %arg1: i32, %arg2: memref<16x128xf32, #tpu.memory_space<vmem>>, %arg3: memref<1x8x128xf32, #tpu.memory_space<vmem>>) attributes {dimension_semantics = [#tpu.dimension_semantics<parallel>, #tpu.dimension_semantics<arbitrary>], iteration_bounds = array<i64: 1, 1>, scalar_prefetch = 0 : i64, scratch_operands = 0 : i64, tpu.core_type = #tpu.core_type<tc>, window_params = [{transform_indices = @transform_0, window_bounds = array<i64: 16, 128>}, {transform_indices = @transform_1, window_bounds = array<i64: 1, 8, 128>}]} {
    %c0_i32 = arith.constant 0 : i32
    %0 = arith.cmpi eq, %arg1, %c0_i32 : i32
    %1 = arith.extui %0 : i1 to i32
    %c0_i32_0 = arith.constant 0 : i32
    %2 = arith.cmpi ne, %1, %c0_i32_0 : i32
    scf.if %2 {
      %cst_10 = arith.constant 0.000000e+00 : f32
      %21 = vector.broadcast %cst_10 : f32 to vector<1x8x128xf32>
      %c0_11 = arith.constant 0 : index
      %c0_12 = arith.constant 0 : index
      %c0_13 = arith.constant 0 : index
      %22 = vector.load %arg3[%c0_11, %c0_12, %c0_13] : memref<1x8x128xf32, #tpu.memory_space<vmem>>, vector<1x8x128xf32>
      tpu.vector_store %arg3[%c0_11, %c0_12, %c0_13], %21 {strides = array<i32>} : memref<1x8x128xf32, #tpu.memory_space<vmem>>, vector<1x8x128xf32>,
    } else {
    }
    %c0 = arith.constant 0 : index
    %c0_1 = arith.constant 0 : index
    %3 = vector.load %arg2[%c0, %c0_1] : memref<16x128xf32, #tpu.memory_space<vmem>>, vector<16x128xf32>
    %cst = arith.constant dense<0xFF800000> : vector<16xf32>
    %4 = vector.multi_reduction <maximumf>, %3, %cst [1] : vector<16x128xf32> to vector<16xf32>
    %5 = vector.shape_cast %4 : vector<16xf32> to vector<16x1xf32>
    %6 = vector.broadcast %5 : vector<16x1xf32> to vector<16x128xf32>
    %7 = arith.subf %3, %6 : vector<16x128xf32>
    %8 = math.exp %7 : vector<16x128xf32>
    %cst_2 = arith.constant dense<0.000000e+00> : vector<16xf32>
    %9 = vector.multi_reduction <add>, %8, %cst_2 [1] : vector<16x128xf32> to vector<16xf32>
    %10 = vector.shape_cast %9 : vector<16xf32> to vector<16x1xf32>
    %11 = tpu.reciprocal %10 {approx = true} : vector<16x1xf32> -> vector<16x1xf32>
    %12 = vector.broadcast %11 : vector<16x1xf32> to vector<16x128xf32>
    %13 = arith.mulf %8, %12 : vector<16x128xf32>
    %c0_3 = arith.constant 0 : index
    %c0_4 = arith.constant 0 : index
    %c0_5 = arith.constant 0 : index
    %14 = vector.load %arg3[%c0_3, %c0_4, %c0_5] : memref<1x8x128xf32, #tpu.memory_space<vmem>>, vector<1x8x128xf32>
    %cst_6 = arith.constant dense<0.000000e+00> : vector<128xf32>
    %15 = vector.multi_reduction <add>, %13, %cst_6 [0] : vector<16x128xf32> to vector<128xf32>
    %16 = vector.shape_cast %15 : vector<128xf32> to vector<1x128xf32>
    %17 = vector.shape_cast %16 : vector<1x128xf32> to vector<1x1x128xf32>
    %18 = vector.broadcast %17 : vector<1x1x128xf32> to vector<1x8x128xf32>
    %19 = arith.addf %14, %18 : vector<1x8x128xf32>
    %c0_7 = arith.constant 0 : index
    %c0_8 = arith.constant 0 : index
    %c0_9 = arith.constant 0 : index
    %20 = vector.load %arg3[%c0_7, %c0_8, %c0_9] : memref<1x8x128xf32, #tpu.memory_space<vmem>>, vector<1x8x128xf32>
    tpu.vector_store %arg3[%c0_7, %c0_8, %c0_9], %19 {strides = array<i32>} : memref<1x8x128xf32, #tpu.memory_space<vmem>>, vector<1x8x128xf32>,
    return
  }
  func.func @transform_0(%arg0: i32, %arg1: i32) -> (i32, i32) {
    %c1_i32 = arith.constant 1 : i32
    %0 = arith.muli %arg0, %c1_i32 : i32
    %1 = arith.addi %0, %arg1 : i32
    %c0_i32 = arith.constant 0 : i32
    %c0_i32_0 = arith.constant 0 : i32
    return %1, %c0_i32 : i32, i32
  }
  func.func @transform_1(%arg0: i32, %arg1: i32) -> (i32, i32, i32) {
    %c0_i32 = arith.constant 0 : i32
    %c0_i32_0 = arith.constant 0 : i32
    %c0_i32_1 = arith.constant 0 : i32
    return %arg0, %c0_i32, %c0_i32_0 : i32, i32, i32
  }
}

module attributes {stable_mosaic.version = 11 : i64} {
  func.func @_broadcast_add_kernel(%arg0: i32, %arg1: memref<1x128xf32, #tpu.memory_space<vmem>>, %arg2: memref<16x128xf32, #tpu.memory_space<vmem>>, %arg3: memref<16x128xf32, #tpu.memory_space<vmem>>) attributes {dimension_semantics = [#tpu.dimension_semantics<parallel>], iteration_bounds = array<i64: 1>, scalar_prefetch = 0 : i64, scratch_operands = 0 : i64, tpu.core_type = #tpu.core_type<tc>, window_params = [{pipeline_mode = #tpu.pipeline_mode<synchronous>, transform_indices = @transform_0, window_bounds = array<i64: 1, 128>}, {transform_indices = @transform_1, window_bounds = array<i64: 16, 128>}, {transform_indices = @transform_2, window_bounds = array<i64: 16, 128>}]} {
    %c0 = arith.constant 0 : index
    %c0_0 = arith.constant 0 : index
    %0 = vector.load %arg2[%c0, %c0_0] : memref<16x128xf32, #tpu.memory_space<vmem>>, vector<16x128xf32>
    %c0_1 = arith.constant 0 : index
    %c0_2 = arith.constant 0 : index
    %1 = vector.load %arg1[%c0_1, %c0_2] : memref<1x128xf32, #tpu.memory_space<vmem>>, vector<1x128xf32>
    %2 = vector.broadcast %1 : vector<1x128xf32> to vector<16x128xf32>
    %3 = arith.addf %0, %2 : vector<16x128xf32>
    %c0_3 = arith.constant 0 : index
    %c0_4 = arith.constant 0 : index
    %4 = vector.load %arg3[%c0_3, %c0_4] : memref<16x128xf32, #tpu.memory_space<vmem>>, vector<16x128xf32>
    tpu.vector_store %arg3[%c0_3, %c0_4], %3 {strides = array<i32>} : memref<16x128xf32, #tpu.memory_space<vmem>>, vector<16x128xf32>,
    return
  }
  func.func @transform_0(%arg0: i32) -> (i32, i32) {
    %c0_i32 = arith.constant 0 : i32
    %c0_i32_0 = arith.constant 0 : i32
    %c0_i32_1 = arith.constant 0 : i32
    return %c0_i32, %c0_i32_0 : i32, i32
  }
  func.func @transform_1(%arg0: i32) -> (i32, i32) {
    %c0_i32 = arith.constant 0 : i32
    %c0_i32_0 = arith.constant 0 : i32
    return %arg0, %c0_i32 : i32, i32
  }
  func.func @transform_2(%arg0: i32) -> (i32, i32) {
    %c0_i32 = arith.constant 0 : i32
    %c0_i32_0 = arith.constant 0 : i32
    return %arg0, %c0_i32 : i32, i32
  }
}

</mosaic_0001>

<bundles_post_ra>
// kernel: token_distribution_regulator.3
= control target key start
LH: loop header
LB: loop body
LE: loop exit
PB: predicated region body
PF: predicated region fallthrough
CT: control target
= control target key end

     0   :  { %s56_s0 = inlined_call_operand.vmem [shape: f32[1,128], index: 0, kind: input, shape index: {}]   ;;  %s57_s1 = inlined_call_operand.vmem [shape: f32[16,128], index: 1, kind: input, shape index: {}, may-alias: {1,2}]   ;;  %s58_s2 = inlined_call_operand.vmem [shape: f32[16,128], index: 2, kind: output, shape index: {}, may-alias: {1,2}]  }
   0x1   :  { %v11_v0 = vld [vmem:[%s57_s1] sm:$0xff]  ;;  %v12_v2 = vld [vmem:[%s57_s1 + $0x8] sm:$0xff] }
   0x2   :  { %v25_v1 = vld [vmem:[%s56_s0] ss:$0 sm:$0xff] }
   0x3   :  { %v17_v3 = vadd.f32 %v25_v1, %v11_v0  ;;  %v18_v4 = vadd.f32 %v25_v1, %v12_v2 }
   0x5   :  { %19 = vst [vmem:[%s58_s2] sm:$0xff] %v17_v3 }
   0x6   :  { %20 = vst [vmem:[%s58_s2 + $0x8] sm:$0xff] %v18_v4 }

// kernel: token_distribution_regulator.2
= control target key start
LH: loop header
LB: loop body
LE: loop exit
PB: predicated region body
PF: predicated region fallthrough
CT: control target
= control target key end

     0   :  { %s103_s0 = inlined_call_operand.vmem [shape: f32[16,128], index: 0, kind: input, shape index: {}]   ;;  %s104_s1 = inlined_call_operand.vmem [shape: f32[1,8,128], index: 1, kind: output, shape index: {}]  }
   0x1   :  { %v35_v0 = vld [vmem:[%s103_s0] sm:$0xff]  ;;  %v36_v1 = vld [vmem:[%s103_s0 + $0x8] sm:$0xff] }
   0x2   :  { %37 = vmax.xlane.f32.xlu0 %v35_v0 }
   0xa   :  { %39 = vmax.xlane.f32.xlu0 %v36_v1 }
  0x75   :  { %v38_v2 = vpop.xlane.xlu0 %37 }
  0x76   :  { %v41_v3 = vsub.f32 %v35_v0, %v38_v2 }
  0x78   :  { %v43_v4 = vmul.f32 1.442695, %v41_v3 }
  0x7a   :  { %76 = vpow2.f32 %v43_v4 }
  0x7d   :  { %v40_v5 = vpop.xlane.xlu0 %39 }
  0x7e   :  { %v42_v6 = vsub.f32 %v36_v1, %v40_v5 }
  0x80   :  { %v77_v7 = vpop.eup %76  ;;  %v45_v8 = vmul.f32 1.442695, %v42_v6 }
  0x81   :  { %47 = vadd.xlane.f32.xlu1 %v77_v7 }
  0x82   :  { %78 = vpow2.f32 %v45_v8 }
  0x88   :  { %v79_v9 = vpop.eup %78 }
  0x89   :  { %49 = vadd.xlane.f32.xlu1 %v79_v9 }
  0xf4   :  { %v48_v10 = vpop.xlane.xlu1 %47 }
  0xf5   :  { %80 = vrcp.f32 %v48_v10 }
  0xfb   :  { %v81_v12 = vpop.eup %80 }
  0xfc   :  { %v50_v11 = vpop.xlane.xlu1 %49  ;;  %v53_v14 = vmul.f32 %v81_v12, %v77_v7 }
  0xfd   :  { %82 = vrcp.f32 %v50_v11 }
 0x103   :  { %v83_v13 = vpop.eup %82 }
 0x104   :  { %v54_v15 = vmul.f32 %v83_v13, %v79_v9 }
 0x106   :  { %v56_v16 = vadd.f32 %v54_v15, %v53_v14 }
 0x108   :  { %v57_v17 = vrot.slane %v56_v16, 4 }
 0x10a   :  { %v58_v18 = vadd.f32 %v57_v17, %v56_v16 }
 0x10c   :  { %v59_v19 = vrot.slane %v58_v18, 2 }
 0x10e   :  { %v60_v20 = vadd.f32 %v59_v19, %v58_v18 }
 0x110   :  { %v61_v21 = vrot.slane %v60_v20, 1 }
 0x112   :  { %v62_v22 = vadd.f32 %v61_v21, %v60_v20 }
 0x114   :  { %64 = vst [vmem:[%s104_s1] sm:$0xff] %v62_v22 }

</bundles_post_ra>
